<compile_context>
chip_gen: v7x
topology: tpu7x:2x2x1
jax: 0.10.0
libtpu: 0.0.40
codegen_flags: <defaults>
</compile_context>

<pallas_src>
import functools
import math

import jax
import jax.numpy as jnp
from jax.experimental import pallas as pl
from jax.experimental.pallas import tpu as pltpu


# Target >= this many grid steps (when T allows) so dimension_semantics=("parallel",)
# shards the frame axis across v7x's 2 TensorCores (ideal range 4-8 per review).
_TARGET_GRID_STEPS = 4


# ---------------------------------------------------------------------------
# Pallas kernel: fused Linear(input_dim -> d_model) + bias + time positional add
# ---------------------------------------------------------------------------
def _input_fc_posenc_kernel(x_ref, w_ref, pe_ref, o_ref):
    # x_ref : [TT, M, Din]  tile of frames; M = max_agents * batch rows per frame
    # w_ref : [Din, D]      input_fc weight, stored transposed to [in, out]
    # pe_ref: [TT, 1, D]    pe[t] + bias (bias folded on the host), f32
    # o_ref : [TT, M, D]
    x = x_ref[...].astype(jnp.float32)
    w = w_ref[...].astype(jnp.float32)

    # Start from the PE(+bias) frame row; it broadcasts over the M rows of each frame
    # on the first accumulation below (no [N*B, D] PE materialisation in HBM).
    y = pe_ref[...]                                             # [TT, 1, D]

    # NOTE(perf-review): the Din-contraction stays on the VPU as `Din` unrolled
    # broadcast-FMAs rather than a K=Din MXU matmul: Din is tiny (~4), the kernel is
    # HBM-write-bound, and each k costs one lane-broadcast + mul/add per output vreg,
    # overlapping the output DMA.  Switch to jnp.dot(preferred_element_type=f32) if
    # heavier compute (e.g. the first encoder projection) is later fused in.
    din = x.shape[-1]
    for k in range(din):
        y = y + x[:, :, k:k + 1] * w[k:k + 1, :][None, :, :]    # [TT,M,1]*[1,1,D]

    o_ref[...] = y.astype(o_ref.dtype)


def _pad_up(v, m):
    return ((v + m - 1) // m) * m


def _vmem_tile_bytes(rows, cols, itemsize):
    """Bytes of a [rows, cols] slab in the native (8,128)-tiled VMEM layout.

    Sub-32-bit dtypes pack along sublanes, so the sublane granule scales with
    4 / itemsize (8 rows for f32, 16 for bf16)."""
    sublane = 8 * (4 // itemsize)
    return _pad_up(rows, sublane) * _pad_up(cols, 128) * itemsize


def _fused_input_fc_posenc(x_tmd, w, pe_t1d, *, tile_t=None, out_dtype=None):
    """x_tmd: [T, M, Din], w: [Din, D], pe_t1d: [T, 1, D] (bias already folded in)."""
    T, M, Din = x_tmd.shape
    D = w.shape[1]
    out_dtype = jnp.dtype(x_tmd.dtype if out_dtype is None else out_dtype)
    x_bytes = jnp.dtype(x_tmd.dtype).itemsize
    o_bytes = out_dtype.itemsize

    # VMEM footprint of one frame of each pipelined buffer (padded tiled layout).
    per_t = (_vmem_tile_bytes(M, Din, x_bytes)     # x tile (Din pads toward 128 lanes)
             + _vmem_tile_bytes(1, D, 4)           # pe row (1 sublane pads to 8)
             + _vmem_tile_bytes(M, D, o_bytes))    # out tile

    if tile_t is None:
        # Big tiles for HBM-roofline efficiency, but (a) keep 2x double-buffered
        # tiles well inside VMEM on every generation (v7x: 64 MiB/TC physical) and
        # (b) split into >= _TARGET_GRID_STEPS steps so v7x megacore gets work on
        # both cores.  Per-step overhead (~0.35 us) is negligible at these sizes.
        budget = 16 << 20                                  # 2x (x + pe + out) buffers
        tile_vmem = max(1, budget // (2 * per_t))
        target_steps = min(T, _TARGET_GRID_STEPS)
        tile_t = max(1, min(tile_vmem, pl.cdiv(T, target_steps)))
    tile_t = max(1, min(int(tile_t), T))

    grid = (pl.cdiv(T, tile_t),)

    # Explicit scoped-VMEM limit: double-buffered tiles + weight + in-kernel f32
    # temporaries (accumulator + broadcast temps) + headroom; capped to stay safely
    # under v7x's 64 MiB/TC physical VMEM.
    pipeline_bytes = 2 * tile_t * per_t + 2 * _vmem_tile_bytes(Din, D, 4)
    temps_bytes = 3 * tile_t * _vmem_tile_bytes(M, D, 4)
    vmem_limit = int(min(max(pipeline_bytes + temps_bytes + (2 << 20), 16 << 20),
                         48 << 20))

    # Note: for fully unmasked lane-dense stores d_model should be a multiple of 128;
    # smaller D still works, just with masked partial stores on the last lane tile.
    return pl.pallas_call(
        _input_fc_posenc_kernel,
        out_shape=jax.ShapeDtypeStruct((T, M, D), out_dtype),
        grid=grid,
        in_specs=[
            pl.BlockSpec((tile_t, M, Din), lambda i: (i, 0, 0)),
            pl.BlockSpec((Din, D), lambda i: (0, 0)),
            pl.BlockSpec((tile_t, 1, D), lambda i: (i, 0, 0)),
        ],
        out_specs=pl.BlockSpec((tile_t, M, D), lambda i: (i, 0, 0)),
        compiler_params=pltpu.CompilerParams(
            dimension_semantics=("parallel",),
            vmem_limit_bytes=vmem_limit,
        ),
    )(x_tmd, w, pe_t1d)


# ---------------------------------------------------------------------------
# Glue: parameter setup, positional-encoding table, forward pass
# ---------------------------------------------------------------------------
def build_pos_enc(max_len, d_model):
    """Matches PositionalAgentEncoding.build_pos_enc (table of shape [max_len, d_model])."""
    position = jnp.arange(max_len, dtype=jnp.float32)[:, None]
    div_term = jnp.exp(
        jnp.arange(0, d_model, 2, dtype=jnp.float32) * (-math.log(10000.0) / d_model)
    )
    pe = jnp.zeros((max_len, d_model), dtype=jnp.float32)
    pe = pe.at[:, 0::2].set(jnp.sin(position * div_term))
    pe = pe.at[:, 1::2].set(jnp.cos(position * div_term)[:, : d_model // 2])
    return pe


def init_params(key, input_dim, d_model, max_t_len=200):
    kw, kb = jax.random.split(key)
    # PyTorch nn.Linear default (Kaiming-uniform) bounds; weight stored transposed [in, out].
    bound = 1.0 / math.sqrt(input_dim)
    w = jax.random.uniform(kw, (input_dim, d_model), jnp.float32, -bound, bound)
    b = jax.random.uniform(kb, (d_model,), jnp.float32, -bound, bound)
    pe = build_pos_enc(max_t_len, d_model)
    return {"w": w, "b": b, "pe": pe}


@functools.partial(jax.jit, static_argnames=("past_frames", "tile_t", "out_dtype"))
def past_trj_enc_forward(past_motion, params, past_frames, tile_t=None, out_dtype=None):
    """Forward pass of PastEncoder's fused front end.

    past_motion: [N, B, Din] with N = past_frames * max_agents (native dtype kept).
    Returns (pasts, None) with pasts shaped [N, B, d_model].
    """
    N, B, Din = past_motion.shape
    T = past_frames
    if N % T != 0:
        raise ValueError(f"N={N} must be an exact multiple of past_frames={T}")
    if T > params["pe"].shape[0]:
        raise ValueError(f"past_frames={T} exceeds max_t_len={params['pe'].shape[0]}")
    A = N // T
    M = A * B
    D = params["w"].shape[1]

    # Free reshape of the contiguous [N, B, Din] = [T, A, B, Din] buffer: the grid
    # tiles over T, every (agent, batch) row of a frame shares the same PE row.
    x_tmd = past_motion.reshape(T, M, Din)

    # Time positional encoding per frame (t_offset = 0), with the Linear bias folded
    # in so the kernel needs no separate bias operand: [T, 1, D], tiny in HBM.
    pe_t1d = (params["pe"][:T] + params["b"][None, :])[:, None, :]

    out_tmd = _fused_input_fc_posenc(
        x_tmd, params["w"], pe_t1d, tile_t=tile_t, out_dtype=out_dtype)

    # .view(T, A, -1, C).view(T, -1, C) -> AgentFormerEncoder -> view back: pure metadata.
    # TODO(synk): AgentFormerEncoder definition not provided in the source module; identity.
    pasts = out_tmd.reshape(N, B, D)
    return pasts, None


if __name__ == "__main__":
    # Small shapes consistent with the module:
    #   past_frames T = 16, max_agents A = 8  -> N = 128
    #   batch B = 2, input_dim = 2*len(input_type) = 4, d_model = 128 (lane-dense output)
    T, A, B = 16, 8, 2
    Din, D = 4, 128
    N = T * A

    key = jax.random.PRNGKey(0)
    k_x, k_p = jax.random.split(key)
    past_motion = jax.random.normal(k_x, (N, B, Din), jnp.float32)
    params = init_params(k_p, Din, D, max_t_len=200)

    # Pure-JAX reference.
    t_idx = jnp.arange(N) // A
    ref = (past_motion @ params["w"]
           + params["b"][None, None, :]
           + params["pe"][t_idx][:, None, :])

    # 1) auto-picked tile: 4 grid steps over T -> both v7x TensorCores get work.
    pasts, attn = past_trj_enc_forward(past_motion, params, past_frames=T)
    pasts = jax.block_until_ready(pasts)
    assert pasts.shape == (N, B, D), pasts.shape
    assert attn is None
    assert jnp.allclose(pasts, ref, atol=1e-4, rtol=1e-4), \
        float(jnp.max(jnp.abs(pasts - ref)))

    # 2) explicit small tile -> longer pipelined grid (grid=(8,)), same numerics.
    pasts2, _ = past_trj_enc_forward(past_motion, params, past_frames=T, tile_t=2)
    pasts2 = jax.block_until_ready(pasts2)
    assert jnp.allclose(pasts2, ref, atol=1e-4, rtol=1e-4), \
        float(jnp.max(jnp.abs(pasts2 - ref)))

    # 3) bf16 output (downstream encoder dtype): halves the dominant HBM write,
    #    f32 accumulation kept inside the kernel.
    pasts3, _ = past_trj_enc_forward(past_motion, params, past_frames=T,
                                     out_dtype=jnp.bfloat16)
    pasts3 = jax.block_until_ready(pasts3)
    assert pasts3.dtype == jnp.bfloat16
    assert jnp.allclose(pasts3.astype(jnp.float32), ref, atol=5e-2, rtol=5e-2), \
        float(jnp.max(jnp.abs(pasts3.astype(jnp.float32) - ref)))

    print("KERNEL_OK")
</pallas_src>

<mosaic_0001>
module attributes {stable_mosaic.version = 11 : i64} {
  func.func @_input_fc_posenc_kernel(%arg0: i32, %arg1: memref<4x16x4xf32, #tpu.memory_space<vmem>>, %arg2: memref<4x128xf32, #tpu.memory_space<vmem>>, %arg3: memref<4x1x128xf32, #tpu.memory_space<vmem>>, %arg4: memref<4x16x128xf32, #tpu.memory_space<vmem>>) attributes {dimension_semantics = [#tpu.dimension_semantics<parallel>], iteration_bounds = array<i64: 4>, scalar_prefetch = 0 : i64, scratch_operands = 0 : i64, tpu.core_type = #tpu.core_type<tc>, window_params = [{transform_indices = @transform_0, window_bounds = array<i64: 4, 16, 4>}, {pipeline_mode = #tpu.pipeline_mode<synchronous>, transform_indices = @transform_1, window_bounds = array<i64: 4, 128>}, {transform_indices = @transform_2, window_bounds = array<i64: 4, 1, 128>}, {transform_indices = @transform_3, window_bounds = array<i64: 4, 16, 128>}]} {
    %c0 = arith.constant 0 : index
    %c0_0 = arith.constant 0 : index
    %c0_1 = arith.constant 0 : index
    %0 = vector.load %arg1[%c0, %c0_0, %c0_1] : memref<4x16x4xf32, #tpu.memory_space<vmem>>, vector<4x16x4xf32>
    %c0_2 = arith.constant 0 : index
    %c0_3 = arith.constant 0 : index
    %1 = vector.load %arg2[%c0_2, %c0_3] : memref<4x128xf32, #tpu.memory_space<vmem>>, vector<4x128xf32>
    %c0_4 = arith.constant 0 : index
    %c0_5 = arith.constant 0 : index
    %c0_6 = arith.constant 0 : index
    %2 = vector.load %arg3[%c0_4, %c0_5, %c0_6] : memref<4x1x128xf32, #tpu.memory_space<vmem>>, vector<4x1x128xf32>
    %3 = vector.extract_strided_slice %0 {offsets = [0, 0, 0], sizes = [4, 16, 1], strides = [1, 1, 1]} : vector<4x16x4xf32> to vector<4x16x1xf32>
    %4 = vector.extract_strided_slice %1 {offsets = [0, 0], sizes = [1, 128], strides = [1, 1]} : vector<4x128xf32> to vector<1x128xf32>
    %5 = vector.shape_cast %4 : vector<1x128xf32> to vector<1x1x128xf32>
    %6 = vector.broadcast %3 : vector<4x16x1xf32> to vector<4x16x128xf32>
    %7 = vector.broadcast %5 : vector<1x1x128xf32> to vector<4x16x128xf32>
    %8 = arith.mulf %6, %7 : vector<4x16x128xf32>
    %9 = vector.broadcast %2 : vector<4x1x128xf32> to vector<4x16x128xf32>
    %10 = arith.addf %9, %8 : vector<4x16x128xf32>
    %11 = vector.extract_strided_slice %0 {offsets = [0, 0, 1], sizes = [4, 16, 1], strides = [1, 1, 1]} : vector<4x16x4xf32> to vector<4x16x1xf32>
    %12 = vector.extract_strided_slice %1 {offsets = [1, 0], sizes = [1, 128], strides = [1, 1]} : vector<4x128xf32> to vector<1x128xf32>
    %13 = vector.shape_cast %12 : vector<1x128xf32> to vector<1x1x128xf32>
    %14 = vector.broadcast %11 : vector<4x16x1xf32> to vector<4x16x128xf32>
    %15 = vector.broadcast %13 : vector<1x1x128xf32> to vector<4x16x128xf32>
    %16 = arith.mulf %14, %15 : vector<4x16x128xf32>
    %17 = arith.addf %10, %16 : vector<4x16x128xf32>
    %18 = vector.extract_strided_slice %0 {offsets = [0, 0, 2], sizes = [4, 16, 1], strides = [1, 1, 1]} : vector<4x16x4xf32> to vector<4x16x1xf32>
    %19 = vector.extract_strided_slice %1 {offsets = [2, 0], sizes = [1, 128], strides = [1, 1]} : vector<4x128xf32> to vector<1x128xf32>
    %20 = vector.shape_cast %19 : vector<1x128xf32> to vector<1x1x128xf32>
    %21 = vector.broadcast %18 : vector<4x16x1xf32> to vector<4x16x128xf32>
    %22 = vector.broadcast %20 : vector<1x1x128xf32> to vector<4x16x128xf32>
    %23 = arith.mulf %21, %22 : vector<4x16x128xf32>
    %24 = arith.addf %17, %23 : vector<4x16x128xf32>
    %25 = vector.extract_strided_slice %0 {offsets = [0, 0, 3], sizes = [4, 16, 1], strides = [1, 1, 1]} : vector<4x16x4xf32> to vector<4x16x1xf32>
    %26 = vector.extract_strided_slice %1 {offsets = [3, 0], sizes = [1, 128], strides = [1, 1]} : vector<4x128xf32> to vector<1x128xf32>
    %27 = vector.shape_cast %26 : vector<1x128xf32> to vector<1x1x128xf32>
    %28 = vector.broadcast %25 : vector<4x16x1xf32> to vector<4x16x128xf32>
    %29 = vector.broadcast %27 : vector<1x1x128xf32> to vector<4x16x128xf32>
    %30 = arith.mulf %28, %29 : vector<4x16x128xf32>
    %31 = arith.addf %24, %30 : vector<4x16x128xf32>
    %c0_7 = arith.constant 0 : index
    %c0_8 = arith.constant 0 : index
    %c0_9 = arith.constant 0 : index
    %32 = vector.load %arg4[%c0_7, %c0_8, %c0_9] : memref<4x16x128xf32, #tpu.memory_space<vmem>>, vector<4x16x128xf32>
    tpu.vector_store %arg4[%c0_7, %c0_8, %c0_9], %31 {strides = array<i32>} : memref<4x16x128xf32, #tpu.memory_space<vmem>>, vector<4x16x128xf32>,
    return
  }
  func.func @transform_0(%arg0: i32) -> (i32, i32, i32) {
    %c0_i32 = arith.constant 0 : i32
    %c0_i32_0 = arith.constant 0 : i32
    %c0_i32_1 = arith.constant 0 : i32
    return %arg0, %c0_i32, %c0_i32_0 : i32, i32, i32
  }
  func.func @transform_1(%arg0: i32) -> (i32, i32) {
    %c0_i32 = arith.constant 0 : i32
    %c0_i32_0 = arith.constant 0 : i32
    %c0_i32_1 = arith.constant 0 : i32
    return %c0_i32, %c0_i32_0 : i32, i32
  }
  func.func @transform_2(%arg0: i32) -> (i32, i32, i32) {
    %c0_i32 = arith.constant 0 : i32
    %c0_i32_0 = arith.constant 0 : i32
    %c0_i32_1 = arith.constant 0 : i32
    return %arg0, %c0_i32, %c0_i32_0 : i32, i32, i32
  }
  func.func @transform_3(%arg0: i32) -> (i32, i32, i32) {
    %c0_i32 = arith.constant 0 : i32
    %c0_i32_0 = arith.constant 0 : i32
    %c0_i32_1 = arith.constant 0 : i32
    return %arg0, %c0_i32, %c0_i32_0 : i32, i32, i32
  }
}

</mosaic_0001>

<bundles_post_ra>
// kernel: past_trj_enc_forward.1
= control target key start
LH: loop header
LB: loop body
LE: loop exit
PB: predicated region body
PF: predicated region fallthrough
CT: control target
= control target key end

     0   :  { %8 = vsyncpa [#allocation3], 0  ;;  %s898_s0 = inlined_call_operand.vmem [shape: f32[16,16,4], index: 0, kind: input, shape index: {}]   ;;  %s899_s1 = inlined_call_operand.vmem [shape: f32[4,128], index: 1, kind: input, shape index: {}]   ;;  %s900_s2 = inlined_call_operand.vmem [shape: f32[16,1,128], index: 2, kind: input, shape index: {}]   ;;  %s901_s3 = inlined_call_operand.hbm [shape: f32[16,16,128], index: 3, kind: output, shape index: {}]  }
   0x1   :  { %10 = vsyncpa [#allocation3 + $0x1], 0  ;;  %s707_s12 = smov 0   ;;  %s709_s13 = smov 0  }
   0x2   :  { %s711_s14 = smov 0   ;;  %s713_s15 = smov 0  }
   0x3 LB: > { %s728_s16 = sadd.s32 4294967295, %s678_s15   ;;  %s541_s17 = sadd.s32 4294967294, %s678_s15   ;;  %s678_s15 = sphi %s713_s15, %s907_s15   ;;  %s674_s14 = sphi %s711_s14, %s906_s14   ;;  %s670_s13 = sphi %s709_s13, %s905_s13   ;;  %s666_s12 = sphi %s707_s12, %s904_s12  }
   0x4   : > { %s732_s18 = sadd.s32 1, %s678_s15   ;;  %s96_s19 = sadd.s32 1, %s674_s14 }
   0x5   : > { %s93_s20 = ssub.s32 %s678_s15, %s732_s18  ;;  %p106_p0 = scmp.ne.s32.totalorder %s674_s14, %s670_s13 }
   0x6   : > { %p94_p1 = scmp.eq.s32.totalorder %s93_s20, 0  ;;  %p107_p2 = scmp.eq.s32.totalorder %s728_s16, 3 }
   0x7   : > { %p112_p3 = scmp.ne.s32.totalorder %s670_s13, %s666_s12  ;;  %p113_p4 = scmp.eq.s32.totalorder %s541_s17, 3 }
   0x8   : > { %s743_s21 = scalar_select %p94_p1, %s674_s14, %s96_s19  }
   0x9   : > { %p745_p5 = por %p107_p2, %p106_p0  ;;  %p749_p6 = por %p113_p4, %p112_p3 }
   0xa   : > { %p544_p7 = scmp.ge.s32.totalorder %s678_s15, 1  ;;  %p152_p8 = scmp.lt.s32.totalorder %s678_s15, 5 }
   0xc   : > { %p153_p9 = pnand %p544_p7, %p152_p8 }
   0xd   : > { %s546_s24 = sshll.u32 (!%p153_p9), %s728_s16, 2  ;;  %v680_v0 = vmov (!%p153_p9), 0   ;;  %v681_v9 = vmov (!%p153_p9), 1   ;;  %v682_v10 = vmov (!%p153_p9), 2   ;;  %v683_v11 = vmov (!%p153_p9), 3   ;;  %s178_s7 = sand.u32 (!%p153_p9), 1, %s670_s13  }
   0xe   : > { %156 = sbr.rel (%p153_p9) target bundleno = 239 (0xef), region = 32  ;;  %609 = vset.pattern.permute.xlu1 (!%p153_p9), %v680_v0  ;;  %608 = vset.pattern.permute.xlu0 (!%p153_p9), %v680_v0  ;;  %p182_p10 = scmp.lt.s32.totalorder (!%p153_p9), %s546_s24, 15  ;;  %v247_v26 = vlaneseq (!%p153_p9)  ;;  %v202_v34 = vld [vmem:[%s899_s1] sm:$0xf] (!%p153_p9) }
   0xf   : > { %s545_s8 = sshll.u32 (!%p153_p9), %s178_s7, 6  ;;  %s562_s10 = sshll.u32 (!%p153_p9), %s728_s16, 10 }
  0x10   : > { %v248_v29 = vshrl.u32 (!%p153_p9), %v247_v26, 7  ;;  %s813_s9 = scalar_lea.vmem (!%p153_p9), [#allocation2], %s545_s8  ;;  %s850_s20 = scalar_lea.hbm (!%p153_p9), %s901_s3, %s562_s10 }
  0x11   : > { %s470_s11 = sshll.u32 (!%p153_p9), %s813_s9, 4  ;;  %s857_s16 = scalar_lea.sflag (!%p153_p9), [#allocation3], %s178_s7  ;;  %s852_s11 = int_to_ptr.vmem [resolvable:$true] %s470_s11 }
  0x12   : > { %v249_v30 = vsub.s32 (!%p153_p9), 0, %v248_v29  ;;  %v325_v31 = vsub.s32 (!%p153_p9), 1, %v248_v29  ;;  %v377_v35 = vsub.s32 (!%p153_p9), 2, %v248_v29  ;;  %v429_v42 = vsub.s32 (!%p153_p9), 3, %v248_v29 }
  0x14   : > { %v773_v36 = vrot.slane (!%p153_p9), %v202_v34, %v249_v30  ;;  %v775_v37 = vrot.slane (!%p153_p9), %v202_v34, %v325_v31  ;;  %v786_v41 = vrot.slane (!%p153_p9), %v202_v34, %v377_v35  ;;  %v795_v50 = vrot.slane (!%p153_p9), %v202_v34, %v429_v42 }
  0x15   : > { %s909_s24 = smov (!%p182_p10, %s546_s24), 15 }
  0x16   : > { %s560_s25 = sshll.u32 %s909_s24, 4  ;;  %s783_s6 = scalar_lea.vmem %s900_s2, %s909_s24 }
  0x17   : > { %s186_s28 = scalar_lea.vmem %s898_s0, %s560_s25  ;;  %v550_v43 = vld [vmem:[%s783_s6] ss:$0 sm:$0xff]  ;;  %v551_v51 = vld [vmem:[%s783_s6 + $0x1] ss:$0 sm:$0xff]  ;;  %v552_v62 = vld [vmem:[%s783_s6 + $0x2] ss:$0 sm:$0xff] }
  0x18   : > { %v196_v1 = vld [vmem:[%s186_s28 + $0x10] sm:$0xff]  ;;  %v194_v2 = vld [vmem:[%s186_s28] sm:$0xff]  ;;  %v197_v3 = vld [vmem:[%s186_s28 + $0x18] sm:$0xff]  ;;  %s616_s24 = scalar_lea.vmem %s852_s11, 1024  ;;  %s684_s25 = smov [#allocation2]  }
  0x19   : > { %219 = vperm.xlu1 %609, %v196_v1   ;;  %209 = vperm.xlu0 %608, %v194_v2   ;;  %v195_v4 = vld [vmem:[%s186_s28 + $0x8] sm:$0xff]  ;;  %v198_v6 = vld [vmem:[%s186_s28 + $0x20] sm:$0xff]  ;;  %v201_v7 = vld [vmem:[%s186_s28 + $0x38] sm:$0xff]  ;;  %p617_p11 = scmp.ne.s32.totalorder %s852_s11, %s616_s24  ;;  %s620_s26 = sshll.u32 %s684_s25, 4  ;;  %s621_s26 = int_to_ptr.vmem [resolvable:$false] %s620_s26 }
  0x1a   : > { %v199_v5 = vld [vmem:[%s186_s28 + $0x28] sm:$0xff]  ;;  %v200_v8 = vld [vmem:[%s186_s28 + $0x30] sm:$0xff]  ;;  %s622_s27 = scalar_lea.vmem %s621_s26, 2048  ;;  %p623_p0 = scmp.lt.s32.totalorder %s852_s11, %s621_s26 }
  0x1b   : > { %p618_p12 = pnand %p617_p11, %p745_p5  ;;  %p624_p1 = scmp.lt.s32.totalorder %s622_s27, %s616_s24 }
  0x1d   : > { %224 = vperm.xlu1 %609, %v197_v3   ;;  %214 = vperm.xlu0 %608, %v195_v4   ;;  %p619_p13 = pneg %p618_p12  ;;  %p625_p2 = por %p624_p1, %p623_p0 }
  0x1f   : > { %p626_p3 = pnand %p625_p2, %p619_p13 }
  0x21   : > { %234 = vperm.xlu1 %609, %v199_v5   ;;  %229 = vperm.xlu0 %608, %v198_v6  }
  0x25   : > { %244 = vperm.xlu1 %609, %v201_v7   ;;  %239 = vperm.xlu0 %608, %v200_v8  }
  0x29   : > { %611 = vset.pattern.permute.xlu1 %v681_v9  ;;  %610 = vset.pattern.permute.xlu0 %v681_v9 }
  0x2a   : > { %296 = vperm.xlu1 %611, %v195_v4   ;;  %292 = vperm.xlu0 %610, %v194_v2  }
  0x2e   : > { %300 = vperm.xlu1 %611, %v196_v1   ;;  %304 = vperm.xlu0 %610, %v197_v3  }
  0x32   : > { %308 = vperm.xlu1 %611, %v198_v6   ;;  %312 = vperm.xlu0 %610, %v199_v5  }
  0x36   : > { %316 = vperm.xlu1 %611, %v200_v8   ;;  %320 = vperm.xlu0 %610, %v201_v7  }
  0x3a   : > { %612 = vset.pattern.permute.xlu1 %v682_v10  ;;  %613 = vset.pattern.permute.xlu0 %v682_v10  ;;  %v553_v10 = vld [vmem:[%s783_s6 + $0x3] ss:$0 sm:$0xff] }
  0x3b   : > { %344 = vperm.xlu1 %612, %v194_v2   ;;  %348 = vperm.xlu0 %613, %v195_v4  }
  0x3f   : > { %352 = vperm.xlu1 %612, %v196_v1   ;;  %360 = vperm.xlu0 %613, %v198_v6  }
  0x43   : > { %356 = vperm.xlu1 %612, %v197_v3   ;;  %368 = vperm.xlu0 %613, %v200_v8  }
  0x47   : > { %364 = vperm.xlu1 %612, %v199_v5   ;;  %614 = vset.pattern.permute.xlu0 %v683_v11 }
  0x48   : > { %396 = vperm.xlu0 %614, %v194_v2  }
  0x4b   : > { %372 = vperm.xlu1 %612, %v201_v7  }
  0x4c   : > { %408 = vperm.xlu0 %614, %v197_v3  }
  0x4f   : > { %615 = vset.pattern.permute.xlu1 %v683_v11 }
  0x50   : > { %400 = vperm.xlu1 %615, %v195_v4   ;;  %416 = vperm.xlu0 %614, %v199_v5  }
  0x54   : > { %404 = vperm.xlu1 %615, %v196_v1   ;;  %424 = vperm.xlu0 %614, %v201_v7  }
  0x58   : > { %412 = vperm.xlu1 %615, %v198_v6  }
  0x5c   : > { %420 = vperm.xlu1 %615, %v200_v8  }
  0x98   : > { %v220_v12 = vpop.permute.xlu1 %219  ;;  %v210_v13 = vpop.permute.xlu0 %209 }
  0x99   : > { %v251_v40 = vmul.f32 %v773_v36, %v210_v13  ;;  %v253_v0 = vmul.f32 %v773_v36, %v220_v12 }
  0x9b   : > { %v283_v48 = vadd.f32 %v550_v43, %v251_v40 }
  0x9c   : > { %v225_v14 = vpop.permute.xlu1 %224  ;;  %v215_v15 = vpop.permute.xlu0 %214 }
  0x9d   : > { %v254_v47 = vmul.f32 %v773_v36, %v225_v14  ;;  %v252_v56 = vmul.f32 %v773_v36, %v215_v15 }
  0x9f   : > { %v286_v55 = vadd.f32 %v551_v51, %v254_v47  ;;  %v284_v5 = vadd.f32 %v550_v43, %v252_v56 }
  0xa0   : > { %v235_v16 = vpop.permute.xlu1 %234  ;;  %v762_v17 = vpop.permute.xlu0 %229 }
  0xa1   : > { %v256_v58 = vmul.f32 %v773_v36, %v235_v16  ;;  %v285_v16 = vadd.f32 %v551_v51, %v253_v0 }
  0xa3   : > { %v288_v9 = vadd.f32 %v552_v62, %v256_v58 }
  0xa4   : > { %v245_v18 = vpop.permute.xlu1 %244  ;;  %v764_v19 = vpop.permute.xlu0 %239 }
  0xa5   : > { %v258_v6 = vmul.f32 %v773_v36, %v245_v18  ;;  %v257_v43 = vmul.f32 %v773_v36, %v764_v19 }
  0xa9   : > { %v297_v20 = vpop.permute.xlu1 %296  ;;  %v293_v21 = vpop.permute.xlu0 %292 }
  0xaa   : > { %v327_v44 = vmul.f32 %v775_v37, %v293_v21  ;;  %v328_v63 = vmul.f32 %v775_v37, %v297_v20 }
  0xac   : > { %v335_v52 = vadd.f32 %v327_v44, %v283_v48  ;;  %v336_v14 = vadd.f32 %v328_v63, %v284_v5 }
  0xad   : > { %v301_v22 = vpop.permute.xlu1 %300  ;;  %v305_v23 = vpop.permute.xlu0 %304 }
  0xae   : > { %v330_v53 = vmul.f32 %v775_v37, %v305_v23  ;;  %v329_v15 = vmul.f32 %v775_v37, %v301_v22  ;;  %v255_v23 = vmul.f32 %v773_v36, %v762_v17 }
  0xb0   : > { %v338_v1 = vadd.f32 %v330_v53, %v286_v55  ;;  %v337_v34 = vadd.f32 %v329_v15, %v285_v16 }
  0xb1   : > { %v766_v24 = vpop.permute.xlu1 %308  ;;  %v313_v25 = vpop.permute.xlu0 %312 }
  0xb2   : > { %v332_v2 = vmul.f32 %v775_v37, %v313_v25  ;;  %v290_v25 = vadd.f32 %v553_v10, %v258_v6  ;;  %v331_v17 = vmul.f32 %v775_v37, %v766_v24 }
  0xb4   : > { %v340_v18 = vadd.f32 %v332_v2, %v288_v9 }
  0xb5   : > { %v768_v27 = vpop.permute.xlu1 %316  ;;  %v321_v28 = vpop.permute.xlu0 %320 }
  0xb6   : > { %v334_v20 = vmul.f32 %v775_v37, %v321_v28  ;;  %v333_v19 = vmul.f32 %v775_v37, %v768_v27 }
  0xb8   : > { %v342_v35 = vadd.f32 %v334_v20, %v290_v25 }
  0xba   : > { %v345_v32 = vpop.permute.xlu1 %344  ;;  %v349_v33 = vpop.permute.xlu0 %348 }
  0xbb   : > { %v379_v49 = vmul.f32 %v786_v41, %v345_v32  ;;  %v380_v7 = vmul.f32 %v786_v41, %v349_v33 }
  0xbd   : > { %v387_v59 = vadd.f32 %v379_v49, %v335_v52  ;;  %v388_v26 = vadd.f32 %v380_v7, %v336_v14 }
  0xbe   : > { %v353_v38 = vpop.permute.xlu1 %352  ;;  %v777_v39 = vpop.permute.xlu0 %360 }
  0xbf   : > { %v381_v29 = vmul.f32 %v786_v41, %v353_v38  ;;  %v287_v38 = vadd.f32 %v552_v62, %v255_v23  ;;  %v383_v44 = vmul.f32 %v786_v41, %v777_v39 }
  0xc1   : > { %v389_v48 = vadd.f32 %v381_v29, %v337_v34  ;;  %v339_v52 = vadd.f32 %v331_v17, %v287_v38 }
  0xc2   : > { %v357_v45 = vpop.permute.xlu1 %356  ;;  %v790_v46 = vpop.permute.xlu0 %368 }
  0xc3   : > { %v382_v60 = vmul.f32 %v786_v41, %v357_v45  ;;  %v391_v55 = vadd.f32 %v383_v44, %v339_v52  ;;  %v385_v56 = vmul.f32 %v786_v41, %v790_v46 }
  0xc5   : > { %v390_v11 = vadd.f32 %v382_v60, %v338_v1 }
  0xc6   : > { %v365_v54 = vpop.permute.xlu1 %364 }
  0xc7   : > { %v397_v57 = vpop.permute.xlu0 %396  ;;  %v384_v13 = vmul.f32 %v786_v41, %v365_v54  ;;  %v289_v54 = vadd.f32 %v553_v10, %v257_v43 }
  0xc8   : > { %v431_v61 = vmul.f32 %v795_v50, %v397_v57 }
  0xc9   : > { %v392_v32 = vadd.f32 %v384_v13, %v340_v18  ;;  %v341_v58 = vadd.f32 %v333_v19, %v289_v54 }
  0xca   : > { %v439_v3 = vadd.f32 %v431_v61, %v387_v59  ;;  %v373_v4 = vpop.permute.xlu1 %372 }
  0xcb   : > { %v409_v8 = vpop.permute.xlu0 %408  ;;  %v386_v33 = vmul.f32 %v786_v41, %v373_v4  ;;  %v393_v37 = vadd.f32 %v385_v56, %v341_v58 }
  0xcc   : > { %447 = vst [vmem:[%s813_s9] sm:$0xff] %v439_v3  ;;  %v434_v12 = vmul.f32 %v795_v50, %v409_v8 }
  0xcd   : > { %v394_v49 = vadd.f32 %v386_v33, %v342_v35 }
  0xce   : > { %v442_v21 = vadd.f32 %v434_v12, %v390_v11 }
  0xcf   : > { %v401_v30 = vpop.permute.xlu1 %400  ;;  %v417_v31 = vpop.permute.xlu0 %416 }
  0xd0   : > { %450 = vst [vmem:[%s813_s9 + $0x18] sm:$0xff] %v442_v21  ;;  %v432_v22 = vmul.f32 %v795_v50, %v401_v30  ;;  %v436_v28 = vmul.f32 %v795_v50, %v417_v31 }
  0xd2   : > { %v440_v40 = vadd.f32 %v432_v22, %v388_v26  ;;  %v444_v42 = vadd.f32 %v436_v28, %v392_v32 }
  0xd3   : > { %v405_v45 = vpop.permute.xlu1 %404  ;;  %v425_v47 = vpop.permute.xlu0 %424 }
  0xd4   : > { %448 = vst [vmem:[%s813_s9 + $0x8] sm:$0xff] %v440_v40  ;;  %452 = vst [vmem:[%s813_s9 + $0x28] sm:$0xff] %v444_v42  ;;  %v433_v24 = vmul.f32 %v795_v50, %v405_v45  ;;  %v438_v51 = vmul.f32 %v795_v50, %v425_v47 }
  0xd6   : > { %v441_v36 = vadd.f32 %v433_v24, %v389_v48  ;;  %v446_v39 = vadd.f32 %v438_v51, %v394_v49 }
  0xd7   : > { %v413_v53 = vpop.permute.xlu1 %412 }
  0xd8   : > { %449 = vst [vmem:[%s813_s9 + $0x10] sm:$0xff] %v441_v36  ;;  %454 = vst [vmem:[%s813_s9 + $0x38] sm:$0xff] %v446_v39  ;;  %v435_v57 = vmul.f32 %v795_v50, %v413_v53 }
  0xda   : > { %v443_v59 = vadd.f32 %v435_v57, %v391_v55 }
  0xdb   : > { %v421_v27 = vpop.permute.xlu1 %420 }
  0xdc   : > { %451 = vst [vmem:[%s813_s9 + $0x20] sm:$0xff] %v443_v59  ;;  %v437_v60 = vmul.f32 %v795_v50, %v421_v27 }
  0xde   : > { %v445_v41 = vadd.f32 %v437_v60, %v393_v37 }
  0xe0   : > { %453 = vst [vmem:[%s813_s9 + $0x30] sm:$0xff] %v445_v41 }
  0xe1   : > { %629 = shalt.err (!%p626_p3)
}
  0xe2   : > { %s630_s28 = scalar_lea.hbm %s850_s20, 1024  ;;  %s634_s4 = scalar_lea.hbm %s901_s3, 4096 }
  0xe3   : > { %p631_p4 = scmp.ne.s32.totalorder %s850_s20, %s630_s28  ;;  %p635_p9 = scmp.lt.u32.totalorder %s850_s20, %s901_s3 }
  0xe4   : > { %p636_p10 = scmp.lt.u32.totalorder %s634_s4, %s630_s28  ;;  %p638_p12 = scmp.lt.u32.totalorder %s630_s28, %s850_s20 }
  0xe5   : > { %p632_p7 = pnand %p631_p4, %p745_p5 }
  0xe6   : > { %p637_p11 = por %p636_p10, %p635_p9 }
  0xe7   : > { %p633_p8 = pneg %p632_p7 }
  0xe8   : > { %p639_p13 = por %p638_p12, %p637_p11 }
  0xea   : > { %p640_p0 = pnand %p639_p13, %p633_p8 }
  0xec   : > { %643 = shalt.err (!%p640_p0)
}
  0xed   : > { %s685_s7 = smov 128   ;;  %s686_s8 = smov 8  }
  0xee   : > { %563 = dma.vmem_to_hbm [thread:$0]  (%p745_p5), %s852_s11, 1024, %s850_s20, %s857_s16, %s685_s7, %s685_s7, %s686_s8  }
  0xef PF: > { %p569_p1 = scmp.ge.s32.totalorder %s678_s15, 2  ;;  %s485_s9 = sand.u32 1, %s666_s12  }
  0xf0   : > { %s486_s10 = scalar_lea.sflag [#allocation3], %s485_s9 }
  0xf1   : > { %p566_p2 = pnand %p569_p1, %p749_p6 }
  0xf3   : > { %661 = dma.done.wait (!%p566_p2), %s486_s10, 1024  }
  0xf4   : > { %663 = vsyncadd (!%p566_p2), %s486_s10, 4294966272  ;;  %p13_p3 = scmp.ge.s32.totalorder %s732_s18, 6   ;;  %s904_s12 = smov %s670_s13 }
  0xf5   : > { %s905_s13 = smov %s674_s14  ;;  %s906_s14 = smov %s743_s21 }
  0xf6   : > { %s907_s15 = smov %s732_s18  ;;  %15 = sbr.rel (!%p13_p3) target bundleno = 3 (0x3), region = 70 }
  0xfd   :  { %491 = vsyncpa [#allocation3], 1 }
  0xfe   :  { %493 = vsyncpa [#allocation3 + $0x1], 1 }

</bundles_post_ra>
